<compile_context>
chip_gen: v6e
topology: v6e:2x2x1
jax: 0.10.0
libtpu: 0.0.40
codegen_flags: <defaults>
</compile_context>

<pallas_src>
import functools

import jax
import jax.numpy as jnp
from jax.experimental import pallas as pl
from jax.experimental.pallas import tpu as pltpu


_NEG_BIG = -1e30


def _round_up(x, m):
    return ((x + m - 1) // m) * m


def _f1_partial_kernel(logit_ref, label_ref, sp_ref, tpr_ref, cnt_ref,
                       *, groups, true_b, need_row_mask):
    # logit_ref: (groups, 8, C_pad) float, label_ref: (groups, 8, 1) int32
    logit = logit_ref[...].astype(jnp.float32)

    # numerically stable softmax over the (padded) class axis
    m = jnp.max(logit, axis=-1, keepdims=True)
    e = jnp.exp(logit - m)
    denom = jnp.sum(e, axis=-1, keepdims=True)
    pred = e * pl.reciprocal(denom, approx=True)      # EUP vrcp, frees VALU

    # one-hot(label) built in-kernel; padded rows carry label == -1 -> all 0
    lbl = label_ref[...]                              # (groups, 8, 1)
    cls = jax.lax.broadcasted_iota(jnp.int32, pred.shape, 2)
    onehot = (cls == lbl).astype(jnp.float32)

    if need_row_mask:
        gi = jax.lax.broadcasted_iota(jnp.int32, (groups, 8, 1), 0)
        si = jax.lax.broadcasted_iota(jnp.int32, (groups, 8, 1), 1)
        row = (pl.program_id(0) * groups + gi) * 8 + si
        pred = pred * (row < true_b).astype(jnp.float32)

    # fold the batch tile into one sublane group: (groups, 8, Cp) -> (8, Cp)
    # pure VPU adds across vregs; no per-step cross-sublane (XLU) reduce.
    sp_ref[...] = jnp.sum(pred, axis=0)
    tpr_ref[...] = jnp.sum(onehot * pred, axis=0)
    cnt_ref[...] = jnp.sum(onehot, axis=0)


def f1_loss(logit, label, num_class, label_smooth=0.0, eps=1e-3,
            input_vmem_budget_bytes=16 * 1024 * 1024, max_tile_rows=2048):
    """logit: (B, C) float, label: (B,) int -> scalar float32 loss."""
    B, C = logit.shape
    assert C == num_class

    C_pad = _round_up(C, 128)

    # Largest batch tile whose double-buffered f32 logit block fits the input
    # budget (conservative vs. v7x's 64 MiB physical VMEM; plenty of headroom
    # on v5e/v6e's 128 MiB).
    per_row = C_pad * 4
    cap = max(8, (input_vmem_budget_bytes // (2 * per_row)) // 8 * 8)
    cap = min(cap, max_tile_rows)
    tile_b = min(_round_up(B, 8), cap)
    B_pad = _round_up(B, tile_b)
    num_tiles = B_pad // tile_b
    groups = tile_b // 8
    need_row_mask = (B_pad != B)

    # pad classes with a very negative logit (softmax -> exactly 0) and rows
    # with zero logits / label = -1 (excluded via one-hot miss + row mask)
    lg = logit
    if B_pad != B:
        lg = jnp.pad(lg, ((0, B_pad - B), (0, 0)))
    if C_pad != C:
        lg = jnp.pad(lg, ((0, 0), (0, C_pad - C)), constant_values=_NEG_BIG)
    lb = label.astype(jnp.int32)
    if B_pad != B:
        lb = jnp.pad(lb, (0, B_pad - B), constant_values=-1)

    logit3 = lg.reshape(B_pad // 8, 8, C_pad)
    label3 = lb.reshape(B_pad // 8, 8, 1)

    kernel = functools.partial(
        _f1_partial_kernel,
        groups=groups, true_b=B, need_row_mask=need_row_mask)

    part_shape = jax.ShapeDtypeStruct((num_tiles, 8, C_pad), jnp.float32)

    # scoped VMEM: double-buffered input blocks + 3 double-buffered outputs
    need = 2 * (tile_b * C_pad * 4 + tile_b * 4) + 2 * 3 * (8 * C_pad * 4)
    vmem_limit = int(min(48 * 1024 * 1024, max(2 * need, 32 * 1024 * 1024)))

    sum_pred, tp_raw, cnt = pl.pallas_call(
        kernel,
        out_shape=(part_shape, part_shape, part_shape),
        grid_spec=pltpu.PrefetchScalarGridSpec(
            num_scalar_prefetch=0,
            grid=(num_tiles,),
            in_specs=[
                pl.BlockSpec((groups, 8, C_pad), lambda i: (i, 0, 0)),
                pl.BlockSpec((groups, 8, 1), lambda i: (i, 0, 0)),
            ],
            out_specs=[
                pl.BlockSpec((None, 8, C_pad), lambda i: (i, 0, 0)),
                pl.BlockSpec((None, 8, C_pad), lambda i: (i, 0, 0)),
                pl.BlockSpec((None, 8, C_pad), lambda i: (i, 0, 0)),
            ],
        ),
        compiler_params=pltpu.CompilerParams(
            dimension_semantics=("parallel",),
            vmem_limit_bytes=vmem_limit),
    )(logit3, label3)

    # epilogue in plain JAX (once per call, ~3*C floats)
    sum_pred = jnp.sum(sum_pred, axis=(0, 1))[:C]
    tp_raw = jnp.sum(tp_raw, axis=(0, 1))[:C]
    cnt = jnp.sum(cnt, axis=(0, 1))[:C]

    ls = float(label_smooth)
    inv_b = 1.0 / float(B)
    # soft = onehot*(1-ls) + ls/C  =>
    tp = ((1.0 - ls) * tp_raw + (ls / num_class) * sum_pred) * inv_b
    fp = sum_pred * inv_b - tp
    fn = (1.0 - ls) * cnt * inv_b + ls / num_class - tp
    p = tp / (tp + fp + eps)
    r = tp / (tp + fn + eps)
    f1 = 2.0 * p * r / (p + r + eps)
    return 1.0 - jnp.mean(f1)


def _f1_loss_ref(logit, label, num_class, label_smooth=0.0, eps=1e-3):
    soft = jax.nn.one_hot(label, num_class) * (1 - label_smooth) + label_smooth / num_class
    pred = jax.nn.softmax(logit, axis=-1)
    tp = jnp.mean(soft * pred, axis=0)
    fp = jnp.mean((1 - soft) * pred, axis=0)
    fn = jnp.mean(soft * (1 - pred), axis=0)
    p = tp / (tp + fp + eps)
    r = tp / (tp + fn + eps)
    f1 = 2 * p * r / (p + r + eps)
    return 1 - jnp.mean(f1)


if __name__ == "__main__":
    NUM_CLASS = 100
    LABEL_SMOOTH = 0.1
    B = 16

    key = jax.random.PRNGKey(0)
    k_logit, k_label = jax.random.split(key)
    logit = jax.random.normal(k_logit, (B, NUM_CLASS), dtype=jnp.float32)
    label = jax.random.randint(k_label, (B,), 0, NUM_CLASS, dtype=jnp.int32)

    loss = f1_loss(logit, label, NUM_CLASS, LABEL_SMOOTH)
    loss = jax.block_until_ready(loss)

    ref = _f1_loss_ref(logit, label, NUM_CLASS, LABEL_SMOOTH)
    # tolerance accounts for pl.reciprocal(approx=True) (~2^-12 rel error)
    assert jnp.allclose(loss, ref, atol=2e-4, rtol=2e-4), (loss, ref)

    print("KERNEL_OK")
</pallas_src>

<mosaic_0001>
module attributes {stable_mosaic.version = 11 : i64} {
  func.func @_f1_partial_kernel(%arg0: i32, %arg1: memref<2x8x128xf32, #tpu.memory_space<vmem>>, %arg2: memref<2x8x1xi32, #tpu.memory_space<vmem>>, %arg3: memref<1x8x128xf32, #tpu.memory_space<vmem>>, %arg4: memref<1x8x128xf32, #tpu.memory_space<vmem>>, %arg5: memref<1x8x128xf32, #tpu.memory_space<vmem>>) attributes {dimension_semantics = [#tpu.dimension_semantics<parallel>], iteration_bounds = array<i64: 1>, scalar_prefetch = 0 : i64, scratch_operands = 0 : i64, tpu.core_type = #tpu.core_type<tc>, window_params = [{transform_indices = @transform_0, window_bounds = array<i64: 2, 8, 128>}, {transform_indices = @transform_1, window_bounds = array<i64: 2, 8, 1>}, {transform_indices = @transform_2, window_bounds = array<i64: 1, 8, 128>}, {transform_indices = @transform_3, window_bounds = array<i64: 1, 8, 128>}, {transform_indices = @transform_4, window_bounds = array<i64: 1, 8, 128>}]} {
    %c0 = arith.constant 0 : index
    %c0_0 = arith.constant 0 : index
    %c0_1 = arith.constant 0 : index
    %0 = vector.load %arg1[%c0, %c0_0, %c0_1] : memref<2x8x128xf32, #tpu.memory_space<vmem>>, vector<2x8x128xf32>
    %cst = arith.constant dense<0xFF800000> : vector<2x8xf32>
    %1 = vector.multi_reduction <maximumf>, %0, %cst [2] : vector<2x8x128xf32> to vector<2x8xf32>
    %2 = vector.shape_cast %1 : vector<2x8xf32> to vector<2x8x1xf32>
    %3 = vector.broadcast %2 : vector<2x8x1xf32> to vector<2x8x128xf32>
    %4 = arith.subf %0, %3 : vector<2x8x128xf32>
    %5 = math.exp %4 : vector<2x8x128xf32>
    %cst_2 = arith.constant dense<0.000000e+00> : vector<2x8xf32>
    %6 = vector.multi_reduction <add>, %5, %cst_2 [2] : vector<2x8x128xf32> to vector<2x8xf32>
    %7 = vector.shape_cast %6 : vector<2x8xf32> to vector<2x8x1xf32>
    %8 = tpu.reciprocal %7 {approx = true} : vector<2x8x1xf32> -> vector<2x8x1xf32>
    %9 = vector.broadcast %8 : vector<2x8x1xf32> to vector<2x8x128xf32>
    %10 = arith.mulf %5, %9 : vector<2x8x128xf32>
    %c0_3 = arith.constant 0 : index
    %c0_4 = arith.constant 0 : index
    %c0_5 = arith.constant 0 : index
    %11 = vector.load %arg2[%c0_3, %c0_4, %c0_5] : memref<2x8x1xi32, #tpu.memory_space<vmem>>, vector<2x8x1xi32>
    %12 = tpu.iota {dimensions = array<i32: 2>} : vector<2x8x128xi32>
    %13 = vector.broadcast %11 : vector<2x8x1xi32> to vector<2x8x128xi32>
    %14 = arith.cmpi eq, %12, %13 : vector<2x8x128xi32>
    %15 = arith.extui %14 : vector<2x8x128xi1> to vector<2x8x128xi32>
    %16 = arith.sitofp %15 : vector<2x8x128xi32> to vector<2x8x128xf32>
    %cst_6 = arith.constant dense<0.000000e+00> : vector<8x128xf32>
    %17 = vector.multi_reduction <add>, %10, %cst_6 [0] : vector<2x8x128xf32> to vector<8x128xf32>
    %c0_7 = arith.constant 0 : index
    %c0_8 = arith.constant 0 : index
    %c0_9 = arith.constant 0 : index
    %18 = vector.load %arg3[%c0_7, %c0_8, %c0_9] : memref<1x8x128xf32, #tpu.memory_space<vmem>>, vector<1x8x128xf32>
    %19 = vector.shape_cast %18 : vector<1x8x128xf32> to vector<8x128xf32>
    %20 = vector.shape_cast %17 : vector<8x128xf32> to vector<1x8x128xf32>
    tpu.vector_store %arg3[%c0_7, %c0_8, %c0_9], %20 {strides = array<i32>} : memref<1x8x128xf32, #tpu.memory_space<vmem>>, vector<1x8x128xf32>,
    %21 = arith.mulf %16, %10 : vector<2x8x128xf32>
    %cst_10 = arith.constant dense<0.000000e+00> : vector<8x128xf32>
    %22 = vector.multi_reduction <add>, %21, %cst_10 [0] : vector<2x8x128xf32> to vector<8x128xf32>
    %c0_11 = arith.constant 0 : index
    %c0_12 = arith.constant 0 : index
    %c0_13 = arith.constant 0 : index
    %23 = vector.load %arg4[%c0_11, %c0_12, %c0_13] : memref<1x8x128xf32, #tpu.memory_space<vmem>>, vector<1x8x128xf32>
    %24 = vector.shape_cast %23 : vector<1x8x128xf32> to vector<8x128xf32>
    %25 = vector.shape_cast %22 : vector<8x128xf32> to vector<1x8x128xf32>
    tpu.vector_store %arg4[%c0_11, %c0_12, %c0_13], %25 {strides = array<i32>} : memref<1x8x128xf32, #tpu.memory_space<vmem>>, vector<1x8x128xf32>,
    %cst_14 = arith.constant dense<0.000000e+00> : vector<8x128xf32>
    %26 = vector.multi_reduction <add>, %16, %cst_14 [0] : vector<2x8x128xf32> to vector<8x128xf32>
    %c0_15 = arith.constant 0 : index
    %c0_16 = arith.constant 0 : index
    %c0_17 = arith.constant 0 : index
    %27 = vector.load %arg5[%c0_15, %c0_16, %c0_17] : memref<1x8x128xf32, #tpu.memory_space<vmem>>, vector<1x8x128xf32>
    %28 = vector.shape_cast %27 : vector<1x8x128xf32> to vector<8x128xf32>
    %29 = vector.shape_cast %26 : vector<8x128xf32> to vector<1x8x128xf32>
    tpu.vector_store %arg5[%c0_15, %c0_16, %c0_17], %29 {strides = array<i32>} : memref<1x8x128xf32, #tpu.memory_space<vmem>>, vector<1x8x128xf32>,
    return
  }
  func.func @transform_0(%arg0: i32) -> (i32, i32, i32) {
    %c0_i32 = arith.constant 0 : i32
    %c0_i32_0 = arith.constant 0 : i32
    %c0_i32_1 = arith.constant 0 : i32
    return %arg0, %c0_i32, %c0_i32_0 : i32, i32, i32
  }
  func.func @transform_1(%arg0: i32) -> (i32, i32, i32) {
    %c0_i32 = arith.constant 0 : i32
    %c0_i32_0 = arith.constant 0 : i32
    %c0_i32_1 = arith.constant 0 : i32
    return %arg0, %c0_i32, %c0_i32_0 : i32, i32, i32
  }
  func.func @transform_2(%arg0: i32) -> (i32, i32, i32) {
    %c0_i32 = arith.constant 0 : i32
    %c0_i32_0 = arith.constant 0 : i32
    %c0_i32_1 = arith.constant 0 : i32
    return %arg0, %c0_i32, %c0_i32_0 : i32, i32, i32
  }
  func.func @transform_3(%arg0: i32) -> (i32, i32, i32) {
    %c0_i32 = arith.constant 0 : i32
    %c0_i32_0 = arith.constant 0 : i32
    %c0_i32_1 = arith.constant 0 : i32
    return %arg0, %c0_i32, %c0_i32_0 : i32, i32, i32
  }
  func.func @transform_4(%arg0: i32) -> (i32, i32, i32) {
    %c0_i32 = arith.constant 0 : i32
    %c0_i32_0 = arith.constant 0 : i32
    %c0_i32_1 = arith.constant 0 : i32
    return %arg0, %c0_i32, %c0_i32_0 : i32, i32, i32
  }
}

</mosaic_0001>

<bundles_post_ra>
// kernel: tpu_custom_call.1
= control target key start
LH: loop header
LB: loop body
LE: loop exit
PB: predicated region body
PF: predicated region fallthrough
CT: control target
= control target key end

     0   :  { %10 = vsyncpa [#allocation3], 0  ;;  %s233_s0 = inlined_call_operand.vmem [shape: f32[2,8,128], index: 0, kind: input, shape index: {}]   ;;  %s234_s1 = inlined_call_operand.vmem [shape: s32[2,8,1], index: 1, kind: input, shape index: {}]   ;;  %s235_s2 = inlined_call_operand.hbm [shape: f32[1,8,128], index: 2, kind: output, shape index: {0}]   ;;  %s236_s3 = inlined_call_operand.hbm [shape: f32[1,8,128], index: 3, kind: output, shape index: {1}]   ;;  %s237_s4 = inlined_call_operand.hbm [shape: f32[1,8,128], index: 4, kind: output, shape index: {2}]  }
   0x1   :  { %v16_v0 = vld [vmem:[%s233_s0] sm:$0xff] }
   0x2   :  { %11 = vsyncpa [#allocation5], 0  ;;  %18 = vmax.xlane.f32.xlu0 %v16_v0  ;;  %v17_v1 = vld [vmem:[%s233_s0 + $0x8] sm:$0xff]  ;;  %v36_v2 = vld [vmem:[%s234_s1] sm:$0xff]  ;;  %v182_v3 = vmov 0   ;;  %v38_v13 = vlaneseq  ;;  %v183_v19 = vmov 0.0  }
   0x3   :  { %108 = vset.pattern.permute.xlu0 %v182_v3  ;;  %109 = vset.pattern.permute.xlu1 %v182_v3  ;;  %v37_v12 = vld [vmem:[%s234_s1 + $0x8] sm:$0xff]  ;;  %s184_s1 = smov [#allocation2]   ;;  %s185_s23 = smov [#allocation4]  }
   0x4   :  { %v39_v15 = vand.u32 127, %v38_v13  ;;  %s66_s22 = sshll.u32 %s184_s1, 4  ;;  %s76_s24 = sshll.u32 %s185_s23, 4  ;;  %s67_s22 = int_to_ptr.vmem [resolvable:$true] %s66_s22  ;;  %s77_s24 = int_to_ptr.vmem [resolvable:$true] %s76_s24 }
   0x5   :  { %s186_s25 = smov [#allocation6]   ;;  %s118_s27 = scalar_lea.vmem %s67_s22, 128 }
   0x6   :  { %20 = vmax.xlane.f32.xlu0 %v17_v1  ;;  %s86_s26 = sshll.u32 %s186_s25, 4  ;;  %p119_p0 = scmp.ne.s32.totalorder %s67_s22, %s118_s27  ;;  %s87_s26 = int_to_ptr.vmem [resolvable:$true] %s86_s26 }
   0x7   :  { %p123_p1 = scmp.lt.s32.totalorder %s67_s22, %s67_s22  ;;  %p124_p2 = scmp.lt.s32.totalorder %s118_s27, %s118_s27 }
   0x9   :  { %p125_p3 = por %p124_p2, %p123_p1 }
   0xb   :  { %p126_p4 = pnand %p125_p3, %p119_p0 }
  0x1c   :  { %41 = vperm.xlu0 %108, %v36_v2  }
  0x8b   :  { %v19_v4 = vpop.xlane.xlu0 %18 }
  0x8c   :  { %v22_v5 = vsub.f32 %v16_v0, %v19_v4 }
  0x8e   :  { %v24_v6 = vmul.f32 1.442695, %v22_v5 }
  0x8f   :  { %v21_v7 = vpop.xlane.xlu0 %20 }
  0x90   :  { %110 = vpow2.f32 %v24_v6  ;;  %v23_v8 = vsub.f32 %v17_v1, %v21_v7 }
  0x92   :  { %v26_v9 = vmul.f32 1.442695, %v23_v8 }
  0x94   :  { %112 = vpow2.f32 %v26_v9 }
  0x97   :  { %v42_v17 = vpop.permute.xlu0 %41 }
  0x98   :  { %vm46_vm0 = vcmp.eq.s32.totalorder %v39_v15, %v42_v17 }
  0x99   :  { %v101_v20 = vsel %vm46_vm0, 1.0, %v183_v19 }
  0x9d   :  { %v111_v10 = vpop.eup %110 }
  0x9e   :  { %28 = vadd.xlane.f32.xlu1 %v111_v10 }
  0xa1   :  { %v113_v11 = vpop.eup %112 }
  0xa2   :  { %30 = vadd.xlane.f32.xlu1 %v113_v11 }
  0xb3   :  { %44 = vperm.xlu1 %109, %v37_v12  }
 0x127   :  { %v29_v14 = vpop.xlane.xlu1 %28 }
 0x128   :  { %114 = vrcp.f32 %v29_v14 }
 0x12b   :  { %v31_v16 = vpop.xlane.xlu1 %30 }
 0x12c   :  { %116 = vrcp.f32 %v31_v16 }
 0x12f   :  { %v45_v18 = vpop.permute.xlu1 %44 }
 0x130   :  { %vm47_vm1 = vcmp.eq.s32.totalorder %v39_v15, %v45_v18 }
 0x131   :  { %v102_v21 = vsel %vm47_vm1, 1.0, %v183_v19 }
 0x132   :  { %v58_v22 = vadd.f32 %v102_v21, %v101_v20 }
 0x134   :  { %59 = vst [vmem:[#allocation6] sm:$0xff] %v58_v22 }
 0x135   :  { %v115_v23 = vpop.eup %114 }
 0x136   :  { %v34_v24 = vmul.f32 %v115_v23, %v111_v10 }
 0x138   :  { %v54_v27 = vmul.f32 %v101_v20, %v34_v24 }
 0x139   :  { %v117_v25 = vpop.eup %116 }
 0x13a   :  { %v35_v26 = vmul.f32 %v117_v25, %v113_v11 }
 0x13c   :  { %v55_v28 = vmul.f32 %v102_v21, %v35_v26  ;;  %v52_v29 = vadd.f32 %v35_v26, %v34_v24 }
 0x13e   :  { %v56_v30 = vadd.f32 %v55_v28, %v54_v27  ;;  %53 = vst [vmem:[#allocation2] sm:$0xff] %v52_v29 }
 0x13f   :  { %129 = shalt.err (!%p126_p4)
}
 0x140   :  { %69 = dma.vmem_to_hbm [thread:$0]  %s67_s22, 128, %s235_s2, [#allocation3]   ;;  %57 = vst [vmem:[#allocation4] sm:$0xff] %v56_v30 }
 0x141   :  { %s138_s30 = scalar_lea.vmem %s77_s24, 128  ;;  %p143_p6 = scmp.lt.s32.totalorder %s77_s24, %s77_s24 }
 0x142   :  { %p139_p5 = scmp.ne.s32.totalorder %s77_s24, %s138_s30  ;;  %p144_p7 = scmp.lt.s32.totalorder %s138_s30, %s138_s30 }
 0x144   :  { %p145_p8 = por %p144_p7, %p143_p6 }
 0x146   :  { %p146_p9 = pnand %p145_p8, %p139_p5 }
 0x148   :  { %149 = shalt.err (!%p146_p9)
}
 0x149   :  { %79 = dma.vmem_to_hbm [thread:$0]  %s77_s24, 128, %s236_s3, [#allocation5]  }
 0x14a   :  { %s158_s7 = scalar_lea.vmem %s87_s26, 128  ;;  %p163_p11 = scmp.lt.s32.totalorder %s87_s26, %s87_s26 }
 0x14b   :  { %p159_p10 = scmp.ne.s32.totalorder %s87_s26, %s158_s7  ;;  %p164_p12 = scmp.lt.s32.totalorder %s158_s7, %s158_s7 }
 0x14d   :  { %p165_p13 = por %p164_p12, %p163_p11 }
 0x14f   :  { %p166_p0 = pnand %p165_p13, %p159_p10 }
 0x151   :  { %169 = shalt.err (!%p166_p0)
}
 0x152   :  { %89 = dma.vmem_to_hbm [thread:$0]  %s87_s26, 128, %s237_s4, [#allocation5]  }
 0x153   :  { %178 = dma.done.wait [#allocation3], 128  }
 0x154   :  { %179 = vsyncadd [#allocation3], 4294967168 }
 0x155   :  { %180 = dma.done.wait [#allocation5], 256  }
 0x156   :  { %181 = vsyncadd [#allocation5], 4294967040 }
 0x157   :  { %99 = vsyncpa [#allocation3], 1 }
 0x158   :  { %100 = vsyncpa [#allocation5], 1 }

</bundles_post_ra>
